<compile_context>
chip_gen: v7x
topology: tpu7x:2x2x1
jax: 0.10.0
libtpu: 0.0.40
codegen_flags: <defaults>
</compile_context>

<pallas_src>
import math

import jax
import jax.numpy as jnp
from jax import lax
from jax.experimental import pallas as pl
from jax.experimental.pallas import tpu as pltpu

INPUT_SIZE = 4
HIDDEN_SIZE = 6
ACTION_SIZE = 2

PAD_F = 128      # lane padding for every feature dimension

# Row layout of the packed parameter array (24 x 128), 8-row (tile) aligned
# per layer so every in-kernel row slice stays inside one (8,128) tile.
N_ROWS = 24
L1_W0, L1_B = 0, 4       # rows 0..3 = W1^T (4x6), row 4 = b1
L2_W0, L2_B = 8, 14      # rows 8..13 = W2^T (6x6), row 14 = b2
L3_W0, L3_B = 16, 22     # rows 16..21 = W3^T (6x2), row 22 = b3


def policy_kernel(xu_ref, params_ref, out_ref):
    # xu_ref: SMEM f32[8] = [x0, x1, x2, x3, u, 0, 0, 0]
    # params_ref: VMEM f32[24, 128] packed parameters (see layout above)

    # ---- fc1: h1 = relu(x @ W1 + b1), scalar-splat (SMEM) x weight-row MACs ----
    acc = params_ref[L1_B:L1_B + 1, :]                              # (1,128) = b1
    for i in range(INPUT_SIZE):
        acc = acc + xu_ref[i] * params_ref[L1_W0 + i:L1_W0 + i + 1, :]
    h1 = jnp.maximum(acc, 0.0)

    # ---- fc2 ----
    acc = params_ref[L2_B:L2_B + 1, :]                              # (1,128) = b2
    for j in range(HIDDEN_SIZE):
        acc = acc + h1[:, j:j + 1] * params_ref[L2_W0 + j:L2_W0 + j + 1, :]
    h2 = jnp.maximum(acc, 0.0)

    # ---- fc3 -> logits ----
    acc = params_ref[L3_B:L3_B + 1, :]                              # (1,128) = b3
    for j in range(HIDDEN_SIZE):
        acc = acc + h2[:, j:j + 1] * params_ref[L3_W0 + j:L3_W0 + j + 1, :]
    logits = acc                                                    # (1,128)

    # ---- softmax / log-softmax over the 2 valid action lanes ----
    lane = lax.broadcasted_iota(jnp.int32, (1, PAD_F), 1)
    valid = lane < ACTION_SIZE
    logits = jnp.where(valid, logits, -1e30)

    m = jnp.max(logits, axis=-1, keepdims=True)                     # (1,1)
    shifted = logits - m
    e = jnp.where(valid, jnp.exp(shifted), 0.0)
    denom = jnp.sum(e, axis=-1, keepdims=True)                      # (1,1)
    probs = e / denom                                               # exact (atol 1e-5)
    log_probs = shifted - jnp.log(denom)                            # log-softmax

    # ---- inverse-CDF categorical sample (2 actions) ----
    # cum[0] = p0; sample = 1 iff p0 < u.  Comparing only lane 0 also clamps
    # the sample to ACTION_SIZE-1 (always a valid index).
    u = xu_ref[INPUT_SIZE]                                          # scalar in SMEM
    p0 = jnp.sum(jnp.where(lane == 0, probs, 0.0), axis=-1, keepdims=True)   # (1,1)
    sample_col = jnp.where(p0 < u, 1.0, 0.0)                                 # (1,1)
    sample_i = sample_col.astype(jnp.int32)

    # log_prob of the sampled action, gathered from the log-softmax.
    logpi_col = jnp.sum(jnp.where(lane == sample_i, log_probs, 0.0),
                        axis=-1, keepdims=True)                              # (1,1)

    # ---- pack everything into one (1,128) lane-dense output ----
    # lanes [0, ACTION_SIZE) = probs, lane ACTION_SIZE = sample,
    # lane ACTION_SIZE+1 = log_pi.
    packed = probs                                                  # already masked
    packed = jnp.where(lane == ACTION_SIZE, sample_col, packed)
    packed = jnp.where(lane == ACTION_SIZE + 1, logpi_col, packed)
    out_ref[...] = packed


def init_params(key):
    """PyTorch nn.Linear-style init: U(-1/sqrt(fan_in), 1/sqrt(fan_in))."""
    def linear(k, fan_in, fan_out):
        kw, kb = jax.random.split(k)
        bound = 1.0 / math.sqrt(fan_in)
        w = jax.random.uniform(kw, (fan_out, fan_in), jnp.float32, -bound, bound)
        b = jax.random.uniform(kb, (fan_out,), jnp.float32, -bound, bound)
        return w, b

    k1, k2, k3 = jax.random.split(key, 3)
    w1, b1 = linear(k1, INPUT_SIZE, HIDDEN_SIZE)
    w2, b2 = linear(k2, HIDDEN_SIZE, HIDDEN_SIZE)
    w3, b3 = linear(k3, HIDDEN_SIZE, ACTION_SIZE)
    return w1, b1, w2, b2, w3, b3


def prepare_params(params):
    """Pack + pad all parameters once (per policy update) into one (24,128) tile."""
    w1, b1, w2, b2, w3, b3 = params
    p = jnp.zeros((N_ROWS, PAD_F), jnp.float32)
    p = p.at[L1_W0:L1_W0 + INPUT_SIZE, :HIDDEN_SIZE].set(w1.T.astype(jnp.float32))
    p = p.at[L1_B, :HIDDEN_SIZE].set(b1.astype(jnp.float32))
    p = p.at[L2_W0:L2_W0 + HIDDEN_SIZE, :HIDDEN_SIZE].set(w2.T.astype(jnp.float32))
    p = p.at[L2_B, :HIDDEN_SIZE].set(b2.astype(jnp.float32))
    p = p.at[L3_W0:L3_W0 + HIDDEN_SIZE, :ACTION_SIZE].set(w3.T.astype(jnp.float32))
    p = p.at[L3_B, :ACTION_SIZE].set(b3.astype(jnp.float32))
    return p


@jax.jit
def policy_forward(packed_params, x, u):
    """Returns (sample, log_pi, probs) — mirrors Policy.forward (probs for checking)."""
    xu = jnp.concatenate([
        x.reshape(-1).astype(jnp.float32),                 # x0..x3
        jnp.reshape(u, (1,)).astype(jnp.float32),          # u
        jnp.zeros((3,), jnp.float32),                      # pad to 8
    ])

    out = pl.pallas_call(
        policy_kernel,
        out_shape=jax.ShapeDtypeStruct((1, PAD_F), jnp.float32),
        in_specs=[
            pl.BlockSpec(memory_space=pltpu.MemorySpace.SMEM),   # xu
            pl.BlockSpec(memory_space=pltpu.MemorySpace.VMEM),   # packed params
        ],
        out_specs=pl.BlockSpec(memory_space=pltpu.MemorySpace.VMEM),
    )(xu, packed_params)

    head = out[0, :ACTION_SIZE + 2]                        # single host-side slice
    probs = head[:ACTION_SIZE]
    sample = head[ACTION_SIZE].astype(jnp.int32)
    log_pi = head[ACTION_SIZE + 1]
    return sample, log_pi, probs


if __name__ == "__main__":
    key = jax.random.PRNGKey(0)
    k_par, k_x, k_u = jax.random.split(key, 3)

    params = init_params(k_par)
    packed_params = prepare_params(params)

    x = jax.random.normal(k_x, (1, INPUT_SIZE), jnp.float32)   # batch=1, as .item() implies
    u = jax.random.uniform(k_u, (), jnp.float32)               # uniform for Categorical sampling

    sample, log_pi, probs = policy_forward(packed_params, x, u)
    jax.block_until_ready((sample, log_pi, probs))

    # Pure-JAX reference of the same forward pass (same inverse-CDF sampling with
    # the same u, comparing only the first ACTION_SIZE-1 cumulative entries so the
    # sampled index is always valid).
    w1, b1, w2, b2, w3, b3 = params
    h1 = jax.nn.relu(x @ w1.T + b1)
    h2 = jax.nn.relu(h1 @ w2.T + b2)
    probs_ref = jax.nn.softmax(h2 @ w3.T + b3, axis=1)[0]
    cum_ref = jnp.cumsum(probs_ref)
    sample_ref = jnp.sum((cum_ref[:ACTION_SIZE - 1] < u).astype(jnp.int32))
    logpi_ref = jnp.log(probs_ref[sample_ref])

    assert jnp.allclose(probs, probs_ref, atol=1e-5), (probs, probs_ref)
    assert int(sample) == int(sample_ref), (int(sample), int(sample_ref))
    assert jnp.allclose(log_pi, logpi_ref, atol=1e-5), (log_pi, logpi_ref)

    sample_number = int(sample)  # mirrors sample_number.item() host-side
    print("KERNEL_OK")
</pallas_src>

<mosaic_0001>
module attributes {stable_mosaic.version = 11 : i64} {
  func.func @policy_kernel(%arg0: memref<8xf32, #tpu.memory_space<smem>>, %arg1: memref<24x128xf32, #tpu.memory_space<vmem>>, %arg2: memref<1x128xf32, #tpu.memory_space<vmem>>) attributes {dimension_semantics = [], scalar_prefetch = 0 : i64, scratch_operands = 0 : i64, tpu.core_type = #tpu.core_type<tc>} {
    %c4 = arith.constant 4 : index
    %c0 = arith.constant 0 : index
    %0 = vector.load %arg1[%c4, %c0] : memref<24x128xf32, #tpu.memory_space<vmem>>, vector<1x128xf32>
    %c0_0 = arith.constant 0 : index
    %1 = memref.load %arg0[%c0_0] : memref<8xf32, #tpu.memory_space<smem>>
    %c0_1 = arith.constant 0 : index
    %c0_2 = arith.constant 0 : index
    %2 = vector.load %arg1[%c0_1, %c0_2] : memref<24x128xf32, #tpu.memory_space<vmem>>, vector<1x128xf32>
    %3 = vector.broadcast %1 : f32 to vector<1x128xf32>
    %4 = arith.mulf %3, %2 : vector<1x128xf32>
    %5 = arith.addf %0, %4 : vector<1x128xf32>
    %c1 = arith.constant 1 : index
    %6 = memref.load %arg0[%c1] : memref<8xf32, #tpu.memory_space<smem>>
    %c1_3 = arith.constant 1 : index
    %c0_4 = arith.constant 0 : index
    %7 = vector.load %arg1[%c1_3, %c0_4] : memref<24x128xf32, #tpu.memory_space<vmem>>, vector<1x128xf32>
    %8 = vector.broadcast %6 : f32 to vector<1x128xf32>
    %9 = arith.mulf %8, %7 : vector<1x128xf32>
    %10 = arith.addf %5, %9 : vector<1x128xf32>
    %c2 = arith.constant 2 : index
    %11 = memref.load %arg0[%c2] : memref<8xf32, #tpu.memory_space<smem>>
    %c2_5 = arith.constant 2 : index
    %c0_6 = arith.constant 0 : index
    %12 = vector.load %arg1[%c2_5, %c0_6] : memref<24x128xf32, #tpu.memory_space<vmem>>, vector<1x128xf32>
    %13 = vector.broadcast %11 : f32 to vector<1x128xf32>
    %14 = arith.mulf %13, %12 : vector<1x128xf32>
    %15 = arith.addf %10, %14 : vector<1x128xf32>
    %c3 = arith.constant 3 : index
    %16 = memref.load %arg0[%c3] : memref<8xf32, #tpu.memory_space<smem>>
    %c3_7 = arith.constant 3 : index
    %c0_8 = arith.constant 0 : index
    %17 = vector.load %arg1[%c3_7, %c0_8] : memref<24x128xf32, #tpu.memory_space<vmem>>, vector<1x128xf32>
    %18 = vector.broadcast %16 : f32 to vector<1x128xf32>
    %19 = arith.mulf %18, %17 : vector<1x128xf32>
    %20 = arith.addf %15, %19 : vector<1x128xf32>
    %cst = arith.constant 0.000000e+00 : f32
    %21 = vector.broadcast %cst : f32 to vector<1x128xf32>
    %22 = arith.maximumf %20, %21 : vector<1x128xf32>
    %c14 = arith.constant 14 : index
    %c0_9 = arith.constant 0 : index
    %23 = vector.load %arg1[%c14, %c0_9] : memref<24x128xf32, #tpu.memory_space<vmem>>, vector<1x128xf32>
    %24 = vector.extract_strided_slice %22 {offsets = [0, 0], sizes = [1, 1], strides = [1, 1]} : vector<1x128xf32> to vector<1x1xf32>
    %c8 = arith.constant 8 : index
    %c0_10 = arith.constant 0 : index
    %25 = vector.load %arg1[%c8, %c0_10] : memref<24x128xf32, #tpu.memory_space<vmem>>, vector<1x128xf32>
    %26 = vector.broadcast %24 : vector<1x1xf32> to vector<1x128xf32>
    %27 = arith.mulf %26, %25 : vector<1x128xf32>
    %28 = arith.addf %23, %27 : vector<1x128xf32>
    %29 = vector.extract_strided_slice %22 {offsets = [0, 1], sizes = [1, 1], strides = [1, 1]} : vector<1x128xf32> to vector<1x1xf32>
    %c9 = arith.constant 9 : index
    %c0_11 = arith.constant 0 : index
    %30 = vector.load %arg1[%c9, %c0_11] : memref<24x128xf32, #tpu.memory_space<vmem>>, vector<1x128xf32>
    %31 = vector.broadcast %29 : vector<1x1xf32> to vector<1x128xf32>
    %32 = arith.mulf %31, %30 : vector<1x128xf32>
    %33 = arith.addf %28, %32 : vector<1x128xf32>
    %34 = vector.extract_strided_slice %22 {offsets = [0, 2], sizes = [1, 1], strides = [1, 1]} : vector<1x128xf32> to vector<1x1xf32>
    %c10 = arith.constant 10 : index
    %c0_12 = arith.constant 0 : index
    %35 = vector.load %arg1[%c10, %c0_12] : memref<24x128xf32, #tpu.memory_space<vmem>>, vector<1x128xf32>
    %36 = vector.broadcast %34 : vector<1x1xf32> to vector<1x128xf32>
    %37 = arith.mulf %36, %35 : vector<1x128xf32>
    %38 = arith.addf %33, %37 : vector<1x128xf32>
    %39 = vector.extract_strided_slice %22 {offsets = [0, 3], sizes = [1, 1], strides = [1, 1]} : vector<1x128xf32> to vector<1x1xf32>
    %c11 = arith.constant 11 : index
    %c0_13 = arith.constant 0 : index
    %40 = vector.load %arg1[%c11, %c0_13] : memref<24x128xf32, #tpu.memory_space<vmem>>, vector<1x128xf32>
    %41 = vector.broadcast %39 : vector<1x1xf32> to vector<1x128xf32>
    %42 = arith.mulf %41, %40 : vector<1x128xf32>
    %43 = arith.addf %38, %42 : vector<1x128xf32>
    %44 = vector.extract_strided_slice %22 {offsets = [0, 4], sizes = [1, 1], strides = [1, 1]} : vector<1x128xf32> to vector<1x1xf32>
    %c12 = arith.constant 12 : index
    %c0_14 = arith.constant 0 : index
    %45 = vector.load %arg1[%c12, %c0_14] : memref<24x128xf32, #tpu.memory_space<vmem>>, vector<1x128xf32>
    %46 = vector.broadcast %44 : vector<1x1xf32> to vector<1x128xf32>
    %47 = arith.mulf %46, %45 : vector<1x128xf32>
    %48 = arith.addf %43, %47 : vector<1x128xf32>
    %49 = vector.extract_strided_slice %22 {offsets = [0, 5], sizes = [1, 1], strides = [1, 1]} : vector<1x128xf32> to vector<1x1xf32>
    %c13 = arith.constant 13 : index
    %c0_15 = arith.constant 0 : index
    %50 = vector.load %arg1[%c13, %c0_15] : memref<24x128xf32, #tpu.memory_space<vmem>>, vector<1x128xf32>
    %51 = vector.broadcast %49 : vector<1x1xf32> to vector<1x128xf32>
    %52 = arith.mulf %51, %50 : vector<1x128xf32>
    %53 = arith.addf %48, %52 : vector<1x128xf32>
    %cst_16 = arith.constant 0.000000e+00 : f32
    %54 = vector.broadcast %cst_16 : f32 to vector<1x128xf32>
    %55 = arith.maximumf %53, %54 : vector<1x128xf32>
    %c22 = arith.constant 22 : index
    %c0_17 = arith.constant 0 : index
    %56 = vector.load %arg1[%c22, %c0_17] : memref<24x128xf32, #tpu.memory_space<vmem>>, vector<1x128xf32>
    %57 = vector.extract_strided_slice %55 {offsets = [0, 0], sizes = [1, 1], strides = [1, 1]} : vector<1x128xf32> to vector<1x1xf32>
    %c16 = arith.constant 16 : index
    %c0_18 = arith.constant 0 : index
    %58 = vector.load %arg1[%c16, %c0_18] : memref<24x128xf32, #tpu.memory_space<vmem>>, vector<1x128xf32>
    %59 = vector.broadcast %57 : vector<1x1xf32> to vector<1x128xf32>
    %60 = arith.mulf %59, %58 : vector<1x128xf32>
    %61 = arith.addf %56, %60 : vector<1x128xf32>
    %62 = vector.extract_strided_slice %55 {offsets = [0, 1], sizes = [1, 1], strides = [1, 1]} : vector<1x128xf32> to vector<1x1xf32>
    %c17 = arith.constant 17 : index
    %c0_19 = arith.constant 0 : index
    %63 = vector.load %arg1[%c17, %c0_19] : memref<24x128xf32, #tpu.memory_space<vmem>>, vector<1x128xf32>
    %64 = vector.broadcast %62 : vector<1x1xf32> to vector<1x128xf32>
    %65 = arith.mulf %64, %63 : vector<1x128xf32>
    %66 = arith.addf %61, %65 : vector<1x128xf32>
    %67 = vector.extract_strided_slice %55 {offsets = [0, 2], sizes = [1, 1], strides = [1, 1]} : vector<1x128xf32> to vector<1x1xf32>
    %c18 = arith.constant 18 : index
    %c0_20 = arith.constant 0 : index
    %68 = vector.load %arg1[%c18, %c0_20] : memref<24x128xf32, #tpu.memory_space<vmem>>, vector<1x128xf32>
    %69 = vector.broadcast %67 : vector<1x1xf32> to vector<1x128xf32>
    %70 = arith.mulf %69, %68 : vector<1x128xf32>
    %71 = arith.addf %66, %70 : vector<1x128xf32>
    %72 = vector.extract_strided_slice %55 {offsets = [0, 3], sizes = [1, 1], strides = [1, 1]} : vector<1x128xf32> to vector<1x1xf32>
    %c19 = arith.constant 19 : index
    %c0_21 = arith.constant 0 : index
    %73 = vector.load %arg1[%c19, %c0_21] : memref<24x128xf32, #tpu.memory_space<vmem>>, vector<1x128xf32>
    %74 = vector.broadcast %72 : vector<1x1xf32> to vector<1x128xf32>
    %75 = arith.mulf %74, %73 : vector<1x128xf32>
    %76 = arith.addf %71, %75 : vector<1x128xf32>
    %77 = vector.extract_strided_slice %55 {offsets = [0, 4], sizes = [1, 1], strides = [1, 1]} : vector<1x128xf32> to vector<1x1xf32>
    %c20 = arith.constant 20 : index
    %c0_22 = arith.constant 0 : index
    %78 = vector.load %arg1[%c20, %c0_22] : memref<24x128xf32, #tpu.memory_space<vmem>>, vector<1x128xf32>
    %79 = vector.broadcast %77 : vector<1x1xf32> to vector<1x128xf32>
    %80 = arith.mulf %79, %78 : vector<1x128xf32>
    %81 = arith.addf %76, %80 : vector<1x128xf32>
    %82 = vector.extract_strided_slice %55 {offsets = [0, 5], sizes = [1, 1], strides = [1, 1]} : vector<1x128xf32> to vector<1x1xf32>
    %c21 = arith.constant 21 : index
    %c0_23 = arith.constant 0 : index
    %83 = vector.load %arg1[%c21, %c0_23] : memref<24x128xf32, #tpu.memory_space<vmem>>, vector<1x128xf32>
    %84 = vector.broadcast %82 : vector<1x1xf32> to vector<1x128xf32>
    %85 = arith.mulf %84, %83 : vector<1x128xf32>
    %86 = arith.addf %81, %85 : vector<1x128xf32>
    %87 = tpu.iota {dimensions = array<i32: 1>} : vector<1x128xi32>
    %c2_i32 = arith.constant 2 : i32
    %88 = vector.broadcast %c2_i32 : i32 to vector<1x128xi32>
    %89 = arith.cmpi slt, %87, %88 : vector<1x128xi32>
    %cst_24 = arith.constant -1.000000e+30 : f32
    %90 = vector.broadcast %cst_24 : f32 to vector<1x128xf32>
    %91 = arith.select %89, %86, %90 : vector<1x128xi1>, vector<1x128xf32>
    %cst_25 = arith.constant dense<0xFF800000> : vector<1xf32>
    %92 = vector.multi_reduction <maximumf>, %91, %cst_25 [1] : vector<1x128xf32> to vector<1xf32>
    %93 = vector.shape_cast %92 : vector<1xf32> to vector<1x1xf32>
    %94 = vector.broadcast %93 : vector<1x1xf32> to vector<1x128xf32>
    %95 = arith.subf %91, %94 : vector<1x128xf32>
    %96 = math.exp %95 : vector<1x128xf32>
    %cst_26 = arith.constant 0.000000e+00 : f32
    %97 = vector.broadcast %cst_26 : f32 to vector<1x128xf32>
    %98 = arith.select %89, %96, %97 : vector<1x128xi1>, vector<1x128xf32>
    %cst_27 = arith.constant dense<0.000000e+00> : vector<1xf32>
    %99 = vector.multi_reduction <add>, %98, %cst_27 [1] : vector<1x128xf32> to vector<1xf32>
    %100 = vector.shape_cast %99 : vector<1xf32> to vector<1x1xf32>
    %101 = vector.broadcast %100 : vector<1x1xf32> to vector<1x128xf32>
    %102 = arith.divf %98, %101 : vector<1x128xf32>
    %103 = math.log %100 : vector<1x1xf32>
    %104 = vector.broadcast %103 : vector<1x1xf32> to vector<1x128xf32>
    %105 = arith.subf %95, %104 : vector<1x128xf32>
    %c4_28 = arith.constant 4 : index
    %106 = memref.load %arg0[%c4_28] : memref<8xf32, #tpu.memory_space<smem>>
    %c0_i32 = arith.constant 0 : i32
    %107 = vector.broadcast %c0_i32 : i32 to vector<1x128xi32>
    %108 = arith.cmpi eq, %87, %107 : vector<1x128xi32>
    %cst_29 = arith.constant 0.000000e+00 : f32
    %109 = vector.broadcast %cst_29 : f32 to vector<1x128xf32>
    %110 = arith.select %108, %102, %109 : vector<1x128xi1>, vector<1x128xf32>
    %cst_30 = arith.constant dense<0.000000e+00> : vector<1xf32>
    %111 = vector.multi_reduction <add>, %110, %cst_30 [1] : vector<1x128xf32> to vector<1xf32>
    %112 = vector.shape_cast %111 : vector<1xf32> to vector<1x1xf32>
    %113 = vector.broadcast %106 : f32 to vector<1x1xf32>
    %114 = arith.cmpf olt, %112, %113 : vector<1x1xf32>
    %cst_31 = arith.constant 1.000000e+00 : f32
    %cst_32 = arith.constant 0.000000e+00 : f32
    %115 = vector.broadcast %cst_31 : f32 to vector<1x1xf32>
    %116 = vector.broadcast %cst_32 : f32 to vector<1x1xf32>
    %117 = arith.select %114, %115, %116 : vector<1x1xi1>, vector<1x1xf32>
    %118 = arith.fptosi %117 : vector<1x1xf32> to vector<1x1xi32>
    %119 = vector.broadcast %118 : vector<1x1xi32> to vector<1x128xi32>
    %120 = arith.cmpi eq, %87, %119 : vector<1x128xi32>
    %cst_33 = arith.constant 0.000000e+00 : f32
    %121 = vector.broadcast %cst_33 : f32 to vector<1x128xf32>
    %122 = arith.select %120, %105, %121 : vector<1x128xi1>, vector<1x128xf32>
    %cst_34 = arith.constant dense<0.000000e+00> : vector<1xf32>
    %123 = vector.multi_reduction <add>, %122, %cst_34 [1] : vector<1x128xf32> to vector<1xf32>
    %124 = vector.shape_cast %123 : vector<1xf32> to vector<1x1xf32>
    %c2_i32_35 = arith.constant 2 : i32
    %125 = vector.broadcast %c2_i32_35 : i32 to vector<1x128xi32>
    %126 = arith.cmpi eq, %87, %125 : vector<1x128xi32>
    %127 = vector.shape_cast %117 : vector<1x1xf32> to vector<1x1xf32>
    %128 = vector.broadcast %127 : vector<1x1xf32> to vector<1x128xf32>
    %129 = arith.select %126, %128, %102 : vector<1x128xi1>, vector<1x128xf32>
    %c3_i32 = arith.constant 3 : i32
    %130 = vector.broadcast %c3_i32 : i32 to vector<1x128xi32>
    %131 = arith.cmpi eq, %87, %130 : vector<1x128xi32>
    %132 = vector.shape_cast %124 : vector<1x1xf32> to vector<1x1xf32>
    %133 = vector.broadcast %132 : vector<1x1xf32> to vector<1x128xf32>
    %134 = arith.select %131, %133, %129 : vector<1x128xi1>, vector<1x128xf32>
    %c0_36 = arith.constant 0 : index
    %c0_37 = arith.constant 0 : index
    %135 = vector.load %arg2[%c0_36, %c0_37] : memref<1x128xf32, #tpu.memory_space<vmem>>, vector<1x128xf32>
    tpu.vector_store %arg2[%c0_36, %c0_37], %134 {strides = array<i32>} : memref<1x128xf32, #tpu.memory_space<vmem>>, vector<1x128xf32>,
    return
  }
}

</mosaic_0001>

<bundles_post_ra>
// kernel: policy_forward.1
= control target key start
LH: loop header
LB: loop body
LE: loop exit
PB: predicated region body
PF: predicated region fallthrough
CT: control target
= control target key end

     0   :  { %7 = vsyncpa [#allocation4], 0  ;;  %s316_s0 = inlined_call_operand.vmem [shape: f32[8], index: 0, kind: input, shape index: {}]   ;;  %s317_s1 = inlined_call_operand.hbm [shape: f32[24,128], index: 1, kind: input, shape index: {}]   ;;  %s318_s2 = inlined_call_operand.vmem [shape: f32[1,128], index: 2, kind: output, shape index: {}]  }
   0x1   :  { %s15_s11 = sshll.u32 %s316_s0, 4  ;;  %s16_s11 = int_to_ptr.vmem [resolvable:$true] %s15_s11 }
   0x2   :  { %8 = vsyncpa [#allocation3], 0  ;;  %s230_s12 = scalar_lea.vmem %s16_s11, 16  ;;  %p235_p1 = scmp.lt.s32.totalorder %s16_s11, %s16_s11 }
   0x3   :  { %p231_p0 = scmp.ne.s32.totalorder %s16_s11, %s230_s12  ;;  %p236_p2 = scmp.lt.s32.totalorder %s230_s12, %s230_s12 }
   0x5   :  { %p237_p3 = por %p236_p2, %p235_p1 }
   0x7   :  { %p238_p4 = pnand %p237_p3, %p231_p0 }
   0x9   :  { %241 = shalt.err (!%p238_p4)
}
   0xa   :  { %s268_s13 = smov [#allocation2]   ;;  %s269_s14 = smov [#allocation5]  }
   0xb   :  { %18 = dma.vmem_to_smem %s16_s11, 16, %s268_s13, [#allocation4]  }
   0xc   :  { %s24_s15 = sshll.u32 %s269_s14, 4  ;;  %s242_s18 = scalar_lea.hbm %s317_s1, 384  ;;  %s25_s15 = int_to_ptr.vmem [resolvable:$true] %s24_s15 }
   0xd   :  { %p243_p5 = scmp.ne.s32.totalorder %s317_s1, %s242_s18  ;;  %p246_p6 = scmp.lt.u32.totalorder %s242_s18, %s317_s1 }
   0xf   :  { %p248_p7 = pnand %p246_p6, %p243_p5 }
  0x11   :  { %251 = shalt.err (!%p248_p7)
}
  0x12   :  { %s252_s22 = scalar_lea.vmem %s25_s15, 384  ;;  %p257_p9 = scmp.lt.s32.totalorder %s25_s15, %s25_s15 }
  0x13   :  { %p253_p8 = scmp.ne.s32.totalorder %s25_s15, %s252_s22  ;;  %p258_p10 = scmp.lt.s32.totalorder %s252_s22, %s252_s22 }
  0x15   :  { %p259_p11 = por %p258_p10, %p257_p9 }
  0x17   :  { %p260_p12 = pnand %p259_p11, %p253_p8 }
  0x19   :  { %263 = shalt.err (!%p260_p12)
}
  0x1a   :  { %s270_s23 = smov 128   ;;  %s271_s24 = smov 8  }
  0x1b   :  { %30 = dma.hbm_to_vmem [thread:$0]  %s317_s1, 384, %s25_s15, [#allocation3], %s270_s23, %s270_s23, %s271_s24  }
  0x1c   :  { %264 = dma.done.wait [#allocation4], 16  }
  0x1d   :  { %265 = vsyncadd [#allocation4], 4294967280 }
  0x1e   :  { %266 = dma.done.wait [#allocation3], 384  }
  0x1f   :  { %267 = vsyncadd [#allocation3], 4294966912 }
  0x20   :  { %37 = sfence }
  0x21   :  { %s39_s27 = sld [smem:[#allocation2]]  ;;  %v272_v0 = vmov 0   ;;  %v273_v1 = vmov 2   ;;  %s195_s28 = sld [smem:[#allocation2 + $0x1]]  ;;  %v40_v2 = vld [vmem:[#allocation5] sm:$0x1] }
  0x22   :  { %212 = vset.pattern.permute.xlu0 %v272_v0  ;;  %214 = vset.pattern.permute.xlu1 %v273_v1  ;;  %s196_s29 = sld [smem:[#allocation2 + $0x2]]  ;;  %s197_s30 = sld [smem:[#allocation2 + $0x3]]  ;;  %v45_v3 = vld [vmem:[#allocation5 + $0x1] sm:$0x1]  ;;  %v38_v4 = vld [vmem:[#allocation5 + $0x4] sm:$0x1] }
  0x23   :  { %v50_v6 = vld [vmem:[#allocation5 + $0x2] sm:$0x1]  ;;  %v55_v11 = vld [vmem:[#allocation5 + $0x3] sm:$0x1]  ;;  %v274_v20 = vmov 1   ;;  %v275_v21 = vmov 3  }
  0x24   :  { %v276_v22 = vmov 4   ;;  %v277_v23 = vmov 5   ;;  %v61_v24 = vld [vmem:[#allocation5 + $0x8] sm:$0x1]  ;;  %v60_v28 = vld [vmem:[#allocation5 + $0xe] sm:$0x1] }
  0x25   :  { %v69_v29 = vld [vmem:[#allocation5 + $0x9] sm:$0x1]  ;;  %v76_v30 = vld [vmem:[#allocation5 + $0xa] sm:$0x1]  ;;  %v83_v35 = vld [vmem:[#allocation5 + $0xb] sm:$0x1] }
  0x26   :  { %v90_v38 = vld [vmem:[#allocation5 + $0xc] sm:$0x1]  ;;  %v97_v39 = vld [vmem:[#allocation5 + $0xd] sm:$0x1]  ;;  %v106_v50 = vld [vmem:[#allocation5 + $0x10] sm:$0x1] }
  0x27   :  { %v41_v5 = vstv %s39_s27  ;;  %v46_v8 = vstv %s195_s28  ;;  %v105_v53 = vld [vmem:[#allocation5 + $0x16] sm:$0x1]  ;;  %v114_v54 = vld [vmem:[#allocation5 + $0x11] sm:$0x1]  ;;  %v121_v58 = vld [vmem:[#allocation5 + $0x12] sm:$0x1] }
  0x28   :  { %v42_v7 = vmul.f32 %v41_v5, %v40_v2  ;;  %v47_v9 = vmul.f32 %v46_v8, %v45_v3  ;;  %v51_v10 = vstv %s196_s29  ;;  %v56_v12 = vstv %s197_s30  ;;  %v128_v61 = vld [vmem:[#allocation5 + $0x13] sm:$0x1]  ;;  %v135_v3 = vld [vmem:[#allocation5 + $0x14] sm:$0x1]  ;;  %s198_s1 = sld [smem:[#allocation2 + $0x4]] }
  0x29   :  { %v52_v14 = vmul.f32 %v51_v10, %v50_v6  ;;  %v57_v16 = vmul.f32 %v56_v12, %v55_v11  ;;  %vm153_vm1 = vcmask 1040384  }
  0x2a   :  { %v43_v13 = vadd.f32 %v42_v7, %v38_v4  ;;  %v142_v4 = vld [vmem:[#allocation5 + $0x15] sm:$0x1] }
  0x2c   :  { %v48_v15 = vadd.f32 %v47_v9, %v43_v13 }
  0x2e   :  { %v53_v17 = vadd.f32 %v52_v14, %v48_v15 }
  0x30   :  { %v58_v18 = vadd.f32 %v57_v16, %v53_v17 }
  0x32   :  { %v59_v19 = vmax.f32 %v58_v18, 0.0 }
  0x34   :  { %64 = vperm.xlu0 %212, %v59_v19   ;;  %78 = vperm.xlu1 %214, %v59_v19  }
  0x38   :  { %213 = vset.pattern.permute.xlu0 %v274_v20  ;;  %215 = vset.pattern.permute.xlu1 %v275_v21 }
  0x39   :  { %71 = vperm.xlu0 %213, %v59_v19   ;;  %85 = vperm.xlu1 %215, %v59_v19  }
  0x3d   :  { %216 = vset.pattern.permute.xlu1 %v276_v22  ;;  %217 = vset.pattern.permute.xlu0 %v277_v23 }
  0x3e   :  { %92 = vperm.xlu1 %216, %v59_v19   ;;  %99 = vperm.xlu0 %217, %v59_v19  }
  0x42   :  { %218 = vset.pattern.permute.xlu1 %v272_v0  ;;  %220 = vset.pattern.permute.xlu0 %v273_v1  ;;  %v149_v0 = vlaneseq }
  0x44   :  { %v150_v7 = vand.u32 127, %v149_v0 }
  0x46   :  { %vm151_vm0 = vcmp.lt.s32.totalorder %v150_v7, 2  ;;  %vm170_vm2 = vcmp.eq.s32.totalorder %v150_v7, 0  ;;  %vm184_vm5 = vcmp.eq.s32.totalorder %v150_v7, 2  ;;  %vm186_vm6 = vcmp.eq.s32.totalorder %v150_v7, 3 }
  0xb3   :  { %v65_v25 = vpop.permute.xlu0 %64  ;;  %v79_v26 = vpop.permute.xlu1 %78 }
  0xb4   :  { %v67_v27 = vmul.f32 %v65_v25, %v61_v24  ;;  %v81_v36 = vmul.f32 %v79_v26, %v76_v30  ;;  %v175_v26 = vstv %s198_s1  ;;  %v278_v30 = vmov 0.0  }
  0xb6   :  { %v68_v33 = vadd.f32 %v67_v27, %v60_v28 }
  0xb8   :  { %v72_v31 = vpop.permute.xlu0 %71  ;;  %v86_v32 = vpop.permute.xlu1 %85 }
  0xb9   :  { %v74_v34 = vmul.f32 %v72_v31, %v69_v29  ;;  %v88_v41 = vmul.f32 %v86_v32, %v83_v35 }
  0xbb   :  { %v75_v37 = vadd.f32 %v74_v34, %v68_v33 }
  0xbd   :  { %v82_v40 = vadd.f32 %v81_v36, %v75_v37  ;;  %v93_v42 = vpop.permute.xlu1 %92  ;;  %v100_v43 = vpop.permute.xlu0 %99 }
  0xbe   :  { %v95_v44 = vmul.f32 %v93_v42, %v90_v38  ;;  %v102_v46 = vmul.f32 %v100_v43, %v97_v39 }
  0xbf   :  { %v89_v45 = vadd.f32 %v88_v41, %v82_v40 }
  0xc1   :  { %v96_v47 = vadd.f32 %v95_v44, %v89_v45 }
  0xc3   :  { %v103_v48 = vadd.f32 %v102_v46, %v96_v47 }
  0xc5   :  { %v104_v49 = vmax.f32 %v103_v48, 0.0 }
  0xc7   :  { %123 = vperm.xlu0 %220, %v104_v49   ;;  %109 = vperm.xlu1 %218, %v104_v49  }
  0xcb   :  { %223 = vset.pattern.permute.xlu0 %v277_v23  ;;  %219 = vset.pattern.permute.xlu1 %v274_v20 }
  0xcc   :  { %144 = vperm.xlu0 %223, %v104_v49   ;;  %116 = vperm.xlu1 %219, %v104_v49  }
  0xd0   :  { %221 = vset.pattern.permute.xlu1 %v275_v21 }
  0xd1   :  { %130 = vperm.xlu1 %221, %v104_v49  }
  0xd5   :  { %222 = vset.pattern.permute.xlu1 %v276_v22 }
  0xd6   :  { %137 = vperm.xlu1 %222, %v104_v49  }
 0x146   :  { %v110_v51 = vpop.permute.xlu1 %109  ;;  %v124_v59 = vpop.permute.xlu0 %123 }
 0x147   :  { %v112_v52 = vmul.f32 %v110_v51, %v106_v50  ;;  %v126_v62 = vmul.f32 %v124_v59, %v121_v58 }
 0x149   :  { %v113_v56 = vadd.f32 %v112_v52, %v105_v53 }
 0x14b   :  { %v117_v55 = vpop.permute.xlu1 %116  ;;  %v145_v5 = vpop.permute.xlu0 %144 }
 0x14c   :  { %v119_v57 = vmul.f32 %v117_v55, %v114_v54  ;;  %v147_v10 = vmul.f32 %v145_v5, %v142_v4 }
 0x14e   :  { %v120_v60 = vadd.f32 %v119_v57, %v113_v56 }
 0x150   :  { %v131_v63 = vpop.permute.xlu1 %130  ;;  %v127_v1 = vadd.f32 %v126_v62, %v120_v60 }
 0x151   :  { %v133_v2 = vmul.f32 %v131_v63, %v128_v61 }
 0x153   :  { %v134_v8 = vadd.f32 %v133_v2, %v127_v1 }
 0x155   :  { %v138_v6 = vpop.permute.xlu1 %137 }
 0x156   :  { %v140_v9 = vmul.f32 %v138_v6, %v135_v3 }
 0x158   :  { %v141_v11 = vadd.f32 %v140_v9, %v134_v8 }
 0x15a   :  { %v148_v12 = vadd.f32 %v147_v10, %v141_v11 }
 0x15c   :  { %v152_v13 = vsel %vm151_vm0, %v148_v12, -1e+30 }
 0x15d   :  { %v154_v14 = vsel %vm153_vm1, %v152_v13, -inf }
 0x15e   :  { %155 = vmax.xlane.f32.xlu1 %v154_v14 }
 0x1eb   :  { %v156_v15 = vpop.xlane.xlu1 %155 }
 0x1ec   :  { %v157_v16 = vsub.f32 %v152_v13, %v156_v15 }
 0x1ee   :  { %v158_v17 = vmul.f32 1.442695, %v157_v16 }
 0x1f0   :  { %224 = vpow2.f32 %v158_v17 }
 0x1fa   :  { %v225_v18 = vpop.eup %224 }
 0x1fb   :  { %v160_v19 = vsel %vm151_vm0, %v225_v18, 0.0 }
 0x1fc   :  { %v161_v20 = vsel %vm153_vm1, %v160_v19, 0.0 }
 0x1fd   :  { %162 = vadd.xlane.f32.xlu0 %v161_v20 }
 0x28a   :  { %v163_v21 = vpop.xlane.xlu0 %162 }
 0x28b   :  { %226 = vrcp.f32 %v163_v21 }
 0x28c   :  { %228 = vlog2.f32 %v163_v21 }
 0x295   :  { %v227_v22 = vpop.eup %226 }
 0x296   :  { %v165_v23 = vmul.f32 %v227_v22, %v160_v19  ;;  %v229_v27 = vpop.eup %228 }
 0x297   :  { %v167_v29 = vmul.f32 0.6931472, %v229_v27 }
 0x298   :  { %v171_v24 = vsel %vm170_vm2, %v165_v23, 0.0 }
 0x299   :  { %v172_v25 = vsel %vm153_vm1, %v171_v24, 0.0  ;;  %v168_v34 = vsub.f32 %v157_v16, %v167_v29 }
 0x29a   :  { %173 = vadd.xlane.f32.xlu1 %v172_v25 }
 0x327   :  { %v174_v28 = vpop.xlane.xlu1 %173 }
 0x328   :  { %vm176_vm3 = vcmp.lt.f32.partialorder %v174_v28, %v175_v26 }
 0x329   :  { %v177_v31 = vsel %vm176_vm3, 1.0, %v278_v30 }
 0x32a   :  { %v199_v32 = vtrunc.f32 %v177_v31  ;;  %v185_v37 = vsel %vm184_vm5, %v177_v31, %v165_v23 }
 0x32c   :  { %v200_v33 = vcvt.f32.s32 %v199_v32 }
 0x32e   :  { %vm179_vm4 = vcmp.eq.s32.totalorder %v150_v7, %v200_v33 }
 0x32f   :  { %v180_v35 = vsel %vm179_vm4, %v168_v34, 0.0 }
 0x330   :  { %v181_v36 = vsel %vm153_vm1, %v180_v35, 0.0 }
 0x331   :  { %182 = vadd.xlane.f32.xlu0 %v181_v36 }
 0x3be   :  { %v183_v38 = vpop.xlane.xlu0 %182 }
 0x3bf   :  { %v187_v39 = vsel %vm186_vm6, %v183_v38, %v185_v37 }
 0x3c0   :  { %188 = vst [vmem:[%s318_s2] sm:$0x1] %v187_v39 }
 0x3c1   :  { %193 = vsyncpa [#allocation3], 1 }
 0x3c2   :  { %194 = vsyncpa [#allocation4], 1 }

</bundles_post_ra>
